<compile_context>
chip_gen: v5e
topology: v5e:2x2
jax: 0.10.0
libtpu: 0.0.40
codegen_flags: <defaults>
</compile_context>

<pallas_src>
import functools

import jax
import jax.numpy as jnp
from jax.experimental import pallas as pl
from jax.experimental.pallas import tpu as pltpu

_LANES = 128
_MAX_ROW_TILE = 2048  # 2048 * 128 * 4 B = 1 MiB per input block


def _nrmse_partial_kernel(pred_ref, tgt_ref, num_out_ref, den_out_ref,
                          num_acc, den_acc, *, rows, row_tile, needs_mask):
    """Accumulates sum((pred-target)^2) and sum(target^2) per lane column across the
    reduction grid axis; writes per-split (1, 128) partial sums on the last step."""
    i = pl.program_id(0)          # core-split axis ("parallel")
    j = pl.program_id(1)          # reduction axis ("arbitrary")
    steps = pl.num_programs(1)

    @pl.when(j == 0)
    def _():
        num_acc[...] = jnp.zeros_like(num_acc)
        den_acc[...] = jnp.zeros_like(den_acc)

    p = pred_ref[...]
    t = tgt_ref[...]
    if needs_mask:
        # Zero out rows past the true row count (partial last block, or a fully
        # out-of-range duplicate block created by clamping the block index).
        row_start = (i * steps + j) * row_tile
        row_ids = row_start + jax.lax.broadcasted_iota(jnp.int32, p.shape, 0)
        valid = row_ids < rows
        p = jnp.where(valid, p, 0.0)
        t = jnp.where(valid, t, 0.0)

    d = p - t
    num_acc[...] += d * d          # elementwise accumulate: stays on the VALU
    den_acc[...] += t * t

    @pl.when(j == steps - 1)
    def _():
        # One cross-sublane reduce per split, outside the hot loop.
        num_out_ref[0] = jnp.sum(num_acc[...], axis=0, keepdims=True)
        den_out_ref[0] = jnp.sum(den_acc[...], axis=0, keepdims=True)


def nrmse_loss(pred: jax.Array, target: jax.Array, dim=(0, 1)) -> jax.Array:
    """Pallas TPU implementation of NRMSELoss.forward (real-valued inputs)."""
    assert pred.shape == target.shape, "pred/target must have identical shapes"
    shape = pred.shape
    n = 1
    for d in dim:
        n *= shape[d]
    total = pred.size

    pred_f = pred.astype(jnp.float32).reshape(-1)
    tgt_f = target.astype(jnp.float32).reshape(-1)

    # Only pad to a multiple of 128 lanes if strictly necessary (<128 zeros).
    if total % _LANES != 0:
        pad = _LANES - total % _LANES
        pred_f = jnp.pad(pred_f, (0, pad))
        tgt_f = jnp.pad(tgt_f, (0, pad))

    rows = pred_f.shape[0] // _LANES
    pred2d = pred_f.reshape(rows, _LANES)   # bitcast reshape, no HBM copy
    tgt2d = tgt_f.reshape(rows, _LANES)

    # Big row tile (multiple of 8 sublanes), capped so double-buffered inputs +
    # accumulators stay well under the scoped VMEM limit on all generations.
    row_tile = min(_MAX_ROW_TILE, ((rows + 7) // 8) * 8)
    num_blocks = pl.cdiv(rows, row_tile)
    n_split = 2 if num_blocks >= 2 else 1     # 2 TensorCores on v7x; harmless elsewhere
    steps = pl.cdiv(num_blocks, n_split)
    needs_mask = (rows % row_tile != 0) or (n_split * steps != num_blocks)

    def in_index_map(i, j):
        # Clamp so we never request a fully out-of-bounds block; the in-kernel row
        # mask zeroes any duplicated/partial data.
        return (jnp.minimum(i * steps + j, num_blocks - 1), 0)

    kernel = functools.partial(
        _nrmse_partial_kernel, rows=rows, row_tile=row_tile, needs_mask=needs_mask)

    num_out, den_out = pl.pallas_call(
        kernel,
        out_shape=(
            jax.ShapeDtypeStruct((n_split, 1, _LANES), jnp.float32),
            jax.ShapeDtypeStruct((n_split, 1, _LANES), jnp.float32),
        ),
        grid_spec=pltpu.PrefetchScalarGridSpec(
            num_scalar_prefetch=0,
            grid=(n_split, steps),
            in_specs=[
                pl.BlockSpec((row_tile, _LANES), in_index_map),
                pl.BlockSpec((row_tile, _LANES), in_index_map),
            ],
            out_specs=[
                pl.BlockSpec((1, 1, _LANES), lambda i, j: (i, 0, 0)),
                pl.BlockSpec((1, 1, _LANES), lambda i, j: (i, 0, 0)),
            ],
            scratch_shapes=[
                pltpu.VMEM((row_tile, _LANES), jnp.float32),
                pltpu.VMEM((row_tile, _LANES), jnp.float32),
            ],
        ),
        compiler_params=pltpu.CompilerParams(
            dimension_semantics=("parallel", "arbitrary")),
    )(pred2d, tgt2d)

    num = jnp.sum(num_out)               # tiny final combine in the wrapper
    den = jnp.sum(den_out)
    return jnp.sqrt(num / n) * jax.lax.rsqrt(den / total)


def _nrmse_ref(pred, target, dim=(0, 1)):
    n = 1
    for d in dim:
        n *= pred.shape[d]
    diff = pred - target
    mse = jnp.sum(jnp.abs(diff) ** 2) / n
    return jnp.sqrt(mse) / jnp.sqrt(jnp.mean(jnp.square(jnp.abs(target))))


if __name__ == "__main__":
    key = jax.random.PRNGKey(0)
    k1, k2 = jax.random.split(key)
    # NCHW inputs consistent with the module's image-loss usage.
    pred = jax.random.normal(k1, (2, 4, 16, 16), dtype=jnp.float32)
    target = jax.random.normal(k2, (2, 4, 16, 16), dtype=jnp.float32)

    out = nrmse_loss(pred, target)
    out = jax.block_until_ready(out)

    ref = _nrmse_ref(pred, target)
    assert jnp.allclose(out, ref, rtol=1e-5, atol=1e-6), (out, ref)
    print("KERNEL_OK")
</pallas_src>

<mosaic_0001>
module attributes {stable_mosaic.version = 11 : i64} {
  func.func @_nrmse_partial_kernel(%arg0: i32, %arg1: i32, %arg2: memref<16x128xf32, #tpu.memory_space<vmem>>, %arg3: memref<16x128xf32, #tpu.memory_space<vmem>>, %arg4: memref<1x1x128xf32, #tpu.memory_space<vmem>>, %arg5: memref<1x1x128xf32, #tpu.memory_space<vmem>>, %arg6: memref<16x128xf32, #tpu.memory_space<vmem>>, %arg7: memref<16x128xf32, #tpu.memory_space<vmem>>) attributes {dimension_semantics = [#tpu.dimension_semantics<parallel>, #tpu.dimension_semantics<arbitrary>], iteration_bounds = array<i64: 1, 1>, scalar_prefetch = 0 : i64, scratch_operands = 2 : i64, tpu.core_type = #tpu.core_type<tc>, window_params = [{transform_indices = @transform_0, window_bounds = array<i64: 16, 128>}, {transform_indices = @transform_1, window_bounds = array<i64: 16, 128>}, {transform_indices = @transform_2, window_bounds = array<i64: 1, 1, 128>}, {transform_indices = @transform_3, window_bounds = array<i64: 1, 1, 128>}]} {
    %c0_i32 = arith.constant 0 : i32
    %0 = arith.cmpi eq, %arg1, %c0_i32 : i32
    %1 = arith.extui %0 : i1 to i32
    %c0_i32_0 = arith.constant 0 : i32
    %2 = arith.cmpi ne, %1, %c0_i32_0 : i32
    scf.if %2 {
      %cst = arith.constant 0.000000e+00 : f32
      %17 = vector.broadcast %cst : f32 to vector<16x128xf32>
      %c0_14 = arith.constant 0 : index
      %c0_15 = arith.constant 0 : index
      %18 = vector.load %arg6[%c0_14, %c0_15] : memref<16x128xf32, #tpu.memory_space<vmem>>, vector<16x128xf32>
      tpu.vector_store %arg6[%c0_14, %c0_15], %17 {strides = array<i32>} : memref<16x128xf32, #tpu.memory_space<vmem>>, vector<16x128xf32>,
      %cst_16 = arith.constant 0.000000e+00 : f32
      %19 = vector.broadcast %cst_16 : f32 to vector<16x128xf32>
      %c0_17 = arith.constant 0 : index
      %c0_18 = arith.constant 0 : index
      %20 = vector.load %arg7[%c0_17, %c0_18] : memref<16x128xf32, #tpu.memory_space<vmem>>, vector<16x128xf32>
      tpu.vector_store %arg7[%c0_17, %c0_18], %19 {strides = array<i32>} : memref<16x128xf32, #tpu.memory_space<vmem>>, vector<16x128xf32>,
    } else {
    }
    %c0 = arith.constant 0 : index
    %c0_1 = arith.constant 0 : index
    %3 = vector.load %arg2[%c0, %c0_1] : memref<16x128xf32, #tpu.memory_space<vmem>>, vector<16x128xf32>
    %c0_2 = arith.constant 0 : index
    %c0_3 = arith.constant 0 : index
    %4 = vector.load %arg3[%c0_2, %c0_3] : memref<16x128xf32, #tpu.memory_space<vmem>>, vector<16x128xf32>
    %5 = arith.subf %3, %4 : vector<16x128xf32>
    %c0_4 = arith.constant 0 : index
    %c0_5 = arith.constant 0 : index
    %6 = vector.load %arg6[%c0_4, %c0_5] : memref<16x128xf32, #tpu.memory_space<vmem>>, vector<16x128xf32>
    %7 = arith.mulf %5, %5 : vector<16x128xf32>
    %8 = arith.addf %6, %7 : vector<16x128xf32>
    %c0_6 = arith.constant 0 : index
    %c0_7 = arith.constant 0 : index
    %9 = vector.load %arg6[%c0_6, %c0_7] : memref<16x128xf32, #tpu.memory_space<vmem>>, vector<16x128xf32>
    tpu.vector_store %arg6[%c0_6, %c0_7], %8 {strides = array<i32>} : memref<16x128xf32, #tpu.memory_space<vmem>>, vector<16x128xf32>,
    %c0_8 = arith.constant 0 : index
    %c0_9 = arith.constant 0 : index
    %10 = vector.load %arg7[%c0_8, %c0_9] : memref<16x128xf32, #tpu.memory_space<vmem>>, vector<16x128xf32>
    %11 = arith.mulf %4, %4 : vector<16x128xf32>
    %12 = arith.addf %10, %11 : vector<16x128xf32>
    %c0_10 = arith.constant 0 : index
    %c0_11 = arith.constant 0 : index
    %13 = vector.load %arg7[%c0_10, %c0_11] : memref<16x128xf32, #tpu.memory_space<vmem>>, vector<16x128xf32>
    tpu.vector_store %arg7[%c0_10, %c0_11], %12 {strides = array<i32>} : memref<16x128xf32, #tpu.memory_space<vmem>>, vector<16x128xf32>,
    %c0_i32_12 = arith.constant 0 : i32
    %14 = arith.cmpi eq, %arg1, %c0_i32_12 : i32
    %15 = arith.extui %14 : i1 to i32
    %c0_i32_13 = arith.constant 0 : i32
    %16 = arith.cmpi ne, %15, %c0_i32_13 : i32
    scf.if %16 {
      %c0_14 = arith.constant 0 : index
      %c0_15 = arith.constant 0 : index
      %17 = vector.load %arg6[%c0_14, %c0_15] : memref<16x128xf32, #tpu.memory_space<vmem>>, vector<16x128xf32>
      %cst = arith.constant dense<0.000000e+00> : vector<128xf32>
      %18 = vector.multi_reduction <add>, %17, %cst [0] : vector<16x128xf32> to vector<128xf32>
      %19 = vector.shape_cast %18 : vector<128xf32> to vector<1x128xf32>
      %c0_16 = arith.constant 0 : index
      %c0_17 = arith.constant 0 : index
      %c0_18 = arith.constant 0 : index
      %20 = vector.load %arg4[%c0_16, %c0_17, %c0_18] : memref<1x1x128xf32, #tpu.memory_space<vmem>>, vector<1x1x128xf32>
      %21 = vector.shape_cast %20 : vector<1x1x128xf32> to vector<1x128xf32>
      %22 = vector.shape_cast %19 : vector<1x128xf32> to vector<1x1x128xf32>
      tpu.vector_store %arg4[%c0_16, %c0_17, %c0_18], %22 {strides = array<i32>} : memref<1x1x128xf32, #tpu.memory_space<vmem>>, vector<1x1x128xf32>,
      %c0_19 = arith.constant 0 : index
      %c0_20 = arith.constant 0 : index
      %23 = vector.load %arg7[%c0_19, %c0_20] : memref<16x128xf32, #tpu.memory_space<vmem>>, vector<16x128xf32>
      %cst_21 = arith.constant dense<0.000000e+00> : vector<128xf32>
      %24 = vector.multi_reduction <add>, %23, %cst_21 [0] : vector<16x128xf32> to vector<128xf32>
      %25 = vector.shape_cast %24 : vector<128xf32> to vector<1x128xf32>
      %c0_22 = arith.constant 0 : index
      %c0_23 = arith.constant 0 : index
      %c0_24 = arith.constant 0 : index
      %26 = vector.load %arg5[%c0_22, %c0_23, %c0_24] : memref<1x1x128xf32, #tpu.memory_space<vmem>>, vector<1x1x128xf32>
      %27 = vector.shape_cast %26 : vector<1x1x128xf32> to vector<1x128xf32>
      %28 = vector.shape_cast %25 : vector<1x128xf32> to vector<1x1x128xf32>
      tpu.vector_store %arg5[%c0_22, %c0_23, %c0_24], %28 {strides = array<i32>} : memref<1x1x128xf32, #tpu.memory_space<vmem>>, vector<1x1x128xf32>,
    } else {
    }
    return
  }
  func.func @transform_0(%arg0: i32, %arg1: i32) -> (i32, i32) {
    %c1_i32 = arith.constant 1 : i32
    %0 = arith.muli %arg0, %c1_i32 : i32
    %1 = arith.addi %0, %arg1 : i32
    %c0_i32 = arith.constant 0 : i32
    %2 = arith.minsi %1, %c0_i32 : i32
    %c0_i32_0 = arith.constant 0 : i32
    %c0_i32_1 = arith.constant 0 : i32
    return %2, %c0_i32_0 : i32, i32
  }
  func.func @transform_1(%arg0: i32, %arg1: i32) -> (i32, i32) {
    %c1_i32 = arith.constant 1 : i32
    %0 = arith.muli %arg0, %c1_i32 : i32
    %1 = arith.addi %0, %arg1 : i32
    %c0_i32 = arith.constant 0 : i32
    %2 = arith.minsi %1, %c0_i32 : i32
    %c0_i32_0 = arith.constant 0 : i32
    %c0_i32_1 = arith.constant 0 : i32
    return %2, %c0_i32_0 : i32, i32
  }
  func.func @transform_2(%arg0: i32, %arg1: i32) -> (i32, i32, i32) {
    %c0_i32 = arith.constant 0 : i32
    %c0_i32_0 = arith.constant 0 : i32
    %c0_i32_1 = arith.constant 0 : i32
    return %arg0, %c0_i32, %c0_i32_0 : i32, i32, i32
  }
  func.func @transform_3(%arg0: i32, %arg1: i32) -> (i32, i32, i32) {
    %c0_i32 = arith.constant 0 : i32
    %c0_i32_0 = arith.constant 0 : i32
    %c0_i32_1 = arith.constant 0 : i32
    return %arg0, %c0_i32, %c0_i32_0 : i32, i32, i32
  }
}

</mosaic_0001>

<bundles_post_ra>
// kernel: tpu_custom_call.1
= control target key start
LH: loop header
LB: loop body
LE: loop exit
PB: predicated region body
PF: predicated region fallthrough
CT: control target
= control target key end

     0   :  { %9 = vsyncpa [#allocation5], 0  ;;  %s306_s0 = inlined_call_operand.hbm [shape: f32[16,128], index: 0, kind: input, shape index: {}]   ;;  %s307_s1 = inlined_call_operand.hbm [shape: f32[16,128], index: 1, kind: input, shape index: {}]   ;;  %s308_s2 = inlined_call_operand.hbm [shape: f32[1,1,128], index: 2, kind: output, shape index: {0}]   ;;  %s309_s3 = inlined_call_operand.hbm [shape: f32[1,1,128], index: 3, kind: output, shape index: {1}]  }
   0x1   :  { %10 = vsyncpa [#allocation8], 0 }
   0x2   :  { %11 = vsyncpa [#allocation6], 0 }
   0x3   :  { %12 = vsyncpa [#allocation11], 0  ;;  %s23_s14 = sshll.u32 %s306_s0, 4  ;;  %s268_s15 = smov [#allocation4]   ;;  %s24_s14 = int_to_ptr.hbm [resolvable:$true] %s23_s14 }
   0x4   :  { %s25_s16 = sshll.u32 %s268_s15, 4  ;;  %s42_s19 = sshll.u32 %s307_s1, 4  ;;  %s26_s16 = int_to_ptr.vmem [resolvable:$true] %s25_s16  ;;  %s43_s19 = int_to_ptr.hbm [resolvable:$true] %s42_s19 }
   0x5   :  { %s269_s20 = smov 128   ;;  %s270_s21 = smov 8  }
   0x6   :  { %31 = dma.hbm_to_vmem [thread:$0]  %s24_s14, 256, %s26_s16, [#allocation5], %s269_s20, %s269_s20, %s270_s21  }
   0x7   :  { %s271_s22 = smov [#allocation7]  }
   0x8   :  { %s44_s23 = sshll.u32 %s271_s22, 4  ;;  %s45_s23 = int_to_ptr.vmem [resolvable:$true] %s44_s23 }
   0x9   :  { %50 = dma.hbm_to_vmem [thread:$0]  %s43_s19, 256, %s45_s23, [#allocation8], %s269_s20, %s269_s20, %s270_s21  }
   0xa   :  { %260 = dma.done.wait [#allocation5], 256  }
   0xb   :  { %261 = vsyncadd [#allocation5], 4294967040 }
   0xc   :  { %262 = dma.done.wait [#allocation8], 256  }
   0xd   :  { %263 = vsyncadd [#allocation8], 4294967040  ;;  %v75_v0 = vld [vmem:[#allocation4] sm:$0xff]  ;;  %v76_v1 = vld [vmem:[#allocation4 + $0x8] sm:$0xff]  ;;  %s272_s0 = smov [#allocation10]   ;;  %s138_s26 = sshll.u32 %s309_s3, 4  ;;  %s139_s26 = int_to_ptr.hbm [resolvable:$true] %s138_s26 }
   0xe   :  { %v77_v2 = vld [vmem:[#allocation7] sm:$0xff]  ;;  %v78_v3 = vld [vmem:[#allocation7 + $0x8] sm:$0xff]  ;;  %s136_s1 = sshll.u32 %s272_s0, 4  ;;  %s273_s27 = smov [#allocation9]   ;;  %s137_s1 = int_to_ptr.vmem [resolvable:$true] %s136_s1 }
   0xf   :  { %v79_v4 = vsub.f32 %v75_v0, %v77_v2  ;;  %v91_v5 = vmul.f32 %v77_v2, %v77_v2  ;;  %v80_v6 = vsub.f32 %v76_v1, %v78_v3  ;;  %v92_v7 = vmul.f32 %v78_v3, %v78_v3  ;;  %s125_s28 = sshll.u32 %s273_s27, 4  ;;  %s127_s4 = sshll.u32 %s308_s2, 4  ;;  %s126_s28 = int_to_ptr.vmem [resolvable:$true] %s125_s28  ;;  %s128_s4 = int_to_ptr.hbm [resolvable:$true] %s127_s4 }
  0x11   :  { %v83_v8 = vmul.f32 %v79_v4, %v79_v4  ;;  %v84_v9 = vmul.f32 %v80_v6, %v80_v6  ;;  %v112_v10 = vadd.f32 %v92_v7, %v91_v5 }
  0x13   :  { %v102_v11 = vadd.f32 %v84_v9, %v83_v8  ;;  %v113_v12 = vrot.slane %v112_v10, 4 }
  0x15   :  { %v103_v13 = vrot.slane %v102_v11, 4  ;;  %v114_v14 = vadd.f32 %v113_v12, %v112_v10 }
  0x17   :  { %v104_v15 = vadd.f32 %v103_v13, %v102_v11  ;;  %v115_v16 = vrot.slane %v114_v14, 2 }
  0x19   :  { %v105_v17 = vrot.slane %v104_v15, 2  ;;  %v116_v18 = vadd.f32 %v115_v16, %v114_v14 }
  0x1b   :  { %v106_v19 = vadd.f32 %v105_v17, %v104_v15  ;;  %v117_v20 = vrot.slane %v116_v18, 1 }
  0x1d   :  { %v107_v21 = vrot.slane %v106_v19, 1  ;;  %v118_v22 = vadd.f32 %v117_v20, %v116_v18 }
  0x1f   :  { %v108_v23 = vadd.f32 %v107_v21, %v106_v19  ;;  %119 = vst [vmem:[#allocation10] sm:$0x1] %v118_v22 }
  0x20   :  { %141 = dma.vmem_to_hbm [thread:$0]  %s137_s1, 16, %s139_s26, [#allocation11]  }
  0x21   :  { %109 = vst [vmem:[#allocation9] sm:$0x1] %v108_v23 }
  0x22   :  { %130 = dma.vmem_to_hbm [thread:$0]  %s126_s28, 16, %s128_s4, [#allocation6]  }
  0x23   :  { %264 = dma.done.wait [#allocation6], 16  }
  0x24   :  { %265 = vsyncadd [#allocation6], 4294967280 }
  0x25   :  { %266 = dma.done.wait [#allocation11], 16  }
  0x26   :  { %267 = vsyncadd [#allocation11], 4294967280 }
  0x27   :  { %150 = vsyncpa [#allocation5], 1 }
  0x28   :  { %151 = vsyncpa [#allocation8], 1 }
  0x29   :  { %152 = vsyncpa [#allocation6], 1 }
  0x2a   :  { %153 = vsyncpa [#allocation11], 1 }

</bundles_post_ra>
